<compile_context>
chip_gen: v5e
topology: v5e:2x2
jax: 0.10.0
libtpu: 0.0.40
codegen_flags: <defaults>
</compile_context>

<pallas_src>
import jax
import jax.numpy as jnp
from jax.experimental import pallas as pl
from jax.experimental.pallas import tpu as pltpu


def _tile_bytes(shape, itemsize):
    """VMEM footprint of one buffer including (8, 128) physical tile padding."""
    s = list(shape)
    s[-1] = -(-s[-1] // 128) * 128
    if len(s) >= 2:
        s[-2] = -(-s[-2] // 8) * 8
    n = 1
    for d in s:
        n *= d
    return n * itemsize


def _vmem_capacity_bytes():
    try:
        info = pltpu.get_tpu_info()
        cap = getattr(info, "vmem_capacity_bytes", None)
        if cap:
            return int(cap)
    except Exception:
        pass
    return 64 << 20  # conservative fallback: v7x per-TensorCore VMEM


def _make_conv_relu_kernel(H, W):
    HW = H * W

    def kernel(x_ref, w_ref, b_ref, m_ref, o_ref):
        # x_ref: (NB, Cin, H*W)   flattened-NCHW activations (compute dtype)
        # w_ref: (9, Cout, Cin)   per-tap weights, tap t = kh*3 + kw
        # b_ref: (Cout, 1)        f32 bias
        # m_ref: (9, 1, H*W)      per-tap boundary masks (1.0 = in-image source)
        # o_ref: (NB, Cout, H*W)  flattened-NCHW output (lane-dense last axis)
        nb = x_ref.shape[0]
        cout = o_ref.shape[1]

        x = x_ref[...]
        w = w_ref[...]
        b = b_ref[...]

        accs = [jnp.zeros((cout, HW), jnp.float32) for _ in range(nb)]

        t = 0
        for dh in (-1, 0, 1):
            for dw in (-1, 0, 1):
                shift = dh * W + dw              # source pixel (flat) = p + shift
                if shift == 0:
                    tap = x                      # centre tap: no shift, no mask
                else:
                    tap = pltpu.roll(x, shift=(-shift) % HW, axis=2)
                    tap = tap * m_ref[t]         # zero out-of-image source pixels
                w_tap = w[t]                     # (Cout, Cin)
                for n in range(nb):              # NB is small & static
                    accs[n] = accs[n] + jnp.dot(
                        w_tap, tap[n], preferred_element_type=jnp.float32)
                t += 1

        for n in range(nb):
            o_ref[n] = jnp.maximum(accs[n] + b, 0.0).astype(o_ref.dtype)

    return kernel


def conv_relu_pallas(x_nchw, weight, bias, *, use_bf16=False, batch_block=None):
    """3x3 Conv2d (stride 1, padding 1) + bias + ReLU.

    x_nchw: (N, Cin, H, W); weight: (Cout, Cin, 3, 3); bias: (Cout,).
    Returns NCHW, same dtype as the input.
    """
    N, Cin, H, W = x_nchw.shape
    Cout = weight.shape[0]
    HW = H * W
    out_dtype = x_nchw.dtype
    compute_dtype = jnp.bfloat16 if use_bf16 else x_nchw.dtype

    # ---- activation / parameter prep (free reshape + O(params) work) -------
    x_flat = x_nchw.reshape(N, Cin, HW).astype(compute_dtype)   # contiguous view
    # w_taps[kh*3 + kw, o, i] = weight[o, i, kh, kw]
    w_taps = jnp.transpose(weight, (2, 3, 0, 1)).reshape(9, Cout, Cin)
    w_taps = w_taps.astype(compute_dtype)
    b_col = bias.astype(jnp.float32).reshape(Cout, 1)

    # Per-tap validity masks on the flattened spatial axis (computed once,
    # 9*HW elements), so the kernel needs no iota / integer-mod lowering.
    pos = jnp.arange(HW, dtype=jnp.int32)
    row = pos // W
    col = pos - row * W
    masks = []
    for dh in (-1, 0, 1):
        for dw in (-1, 0, 1):
            ok = ((row + dh >= 0) & (row + dh < H) &
                  (col + dw >= 0) & (col + dw < W))
            masks.append(ok)
    mask_arr = jnp.stack(masks, 0).astype(compute_dtype).reshape(9, 1, HW)

    # ---- VMEM budgeting: tile padding + double buffering + f32 temporaries -
    vmem_cap = _vmem_capacity_bytes()
    vmem_limit = min(int(vmem_cap * 3 // 4), 96 << 20)
    budget = int(vmem_limit * 0.7)

    itm_in = jnp.dtype(compute_dtype).itemsize
    itm_out = jnp.dtype(out_dtype).itemsize
    in_img = _tile_bytes((1, Cin, HW), itm_in)
    out_img = _tile_bytes((1, Cout, HW), itm_out)
    work_img = 2 * _tile_bytes((1, Cin, HW), 4) + 2 * _tile_bytes((1, Cout, HW), 4)
    per_img = 2 * in_img + 2 * out_img + work_img            # x2 = double buffering
    fixed = 2 * (_tile_bytes((9, Cout, Cin), itm_in)
                 + _tile_bytes((Cout, 1), 4)
                 + _tile_bytes((9, 1, HW), itm_in))

    if batch_block is None:
        cap = max(1, N // 2)      # >= 2 grid steps so both v7x cores get work
        batch_block = 1
        for nb in range(cap, 0, -1):
            if N % nb == 0 and fixed + nb * per_img <= budget:
                batch_block = nb
                break
    NB = batch_block
    assert N % NB == 0
    grid = (N // NB,)
    # TODO(synk): add H-row spatial tiling (1-row halo) for images whose
    # per-image footprint alone exceeds the VMEM budget (hits first on v7x's
    # 64 MiB VMEM).

    cost = pl.CostEstimate(
        flops=2 * N * HW * 9 * Cin * Cout,
        transcendentals=0,
        bytes_accessed=(N * Cin * HW * itm_in + 9 * Cout * Cin * itm_in
                        + Cout * 4 + 9 * HW * itm_in + N * Cout * HW * itm_out),
    )

    out_flat = pl.pallas_call(
        _make_conv_relu_kernel(H, W),
        out_shape=jax.ShapeDtypeStruct((N, Cout, HW), out_dtype),
        grid_spec=pltpu.PrefetchScalarGridSpec(
            num_scalar_prefetch=0,
            grid=grid,
            in_specs=[
                pl.BlockSpec((NB, Cin, HW), lambda n: (n, 0, 0)),
                pl.BlockSpec((9, Cout, Cin), lambda n: (0, 0, 0)),
                pl.BlockSpec((Cout, 1), lambda n: (0, 0)),
                pl.BlockSpec((9, 1, HW), lambda n: (0, 0, 0)),
            ],
            out_specs=pl.BlockSpec((NB, Cout, HW), lambda n: (n, 0, 0)),
        ),
        compiler_params=pltpu.CompilerParams(
            dimension_semantics=("parallel",),
            vmem_limit_bytes=vmem_limit,
        ),
        cost_estimate=cost,
    )(x_flat, w_taps, b_col, mask_arr)

    return out_flat.reshape(N, Cout, H, W)   # free: contiguous NCHW layout


if __name__ == "__main__":
    key = jax.random.PRNGKey(0)
    k_x, k_w, k_b = jax.random.split(key, 3)

    N, Cin, Cout, H, W = 2, 4, 8, 16, 16

    x = jax.random.normal(k_x, (N, Cin, H, W), dtype=jnp.float32)
    # Deterministic synthetic Conv2d parameters.
    weight = jax.random.normal(k_w, (Cout, Cin, 3, 3), dtype=jnp.float32) * 0.1
    bias = jax.random.normal(k_b, (Cout,), dtype=jnp.float32) * 0.1

    out = conv_relu_pallas(x, weight, bias)
    out = jax.block_until_ready(out)

    # Reference: plain JAX conv + bias + relu (same semantics as the PyTorch module).
    ref = jax.lax.conv_general_dilated(
        x, weight, window_strides=(1, 1), padding=((1, 1), (1, 1)),
        dimension_numbers=("NCHW", "OIHW", "NCHW"),
    ) + bias[None, :, None, None]
    ref = jnp.maximum(ref, 0.0)

    assert out.shape == (N, Cout, H, W)
    assert jnp.allclose(out, ref, atol=1e-4, rtol=1e-4)

    print("KERNEL_OK")
</pallas_src>

<mosaic_0001>
module attributes {stable_mosaic.version = 11 : i64} {
  func.func @kernel(%arg0: i32, %arg1: memref<1x4x256xf32, #tpu.memory_space<vmem>>, %arg2: memref<9x8x4xf32, #tpu.memory_space<vmem>>, %arg3: memref<8x1xf32, #tpu.memory_space<vmem>>, %arg4: memref<9x1x256xf32, #tpu.memory_space<vmem>>, %arg5: memref<1x8x256xf32, #tpu.memory_space<vmem>>) attributes {dimension_semantics = [#tpu.dimension_semantics<parallel>], iteration_bounds = array<i64: 2>, scalar_prefetch = 0 : i64, scratch_operands = 0 : i64, tpu.core_type = #tpu.core_type<tc>, window_params = [{transform_indices = @transform_0, window_bounds = array<i64: 1, 4, 256>}, {pipeline_mode = #tpu.pipeline_mode<synchronous>, transform_indices = @transform_1, window_bounds = array<i64: 9, 8, 4>}, {pipeline_mode = #tpu.pipeline_mode<synchronous>, transform_indices = @transform_2, window_bounds = array<i64: 8, 1>}, {pipeline_mode = #tpu.pipeline_mode<synchronous>, transform_indices = @transform_3, window_bounds = array<i64: 9, 1, 256>}, {transform_indices = @transform_4, window_bounds = array<i64: 1, 8, 256>}]} {
    %c0 = arith.constant 0 : index
    %c0_0 = arith.constant 0 : index
    %c0_1 = arith.constant 0 : index
    %0 = vector.load %arg1[%c0, %c0_0, %c0_1] : memref<1x4x256xf32, #tpu.memory_space<vmem>>, vector<1x4x256xf32>
    %c0_2 = arith.constant 0 : index
    %c0_3 = arith.constant 0 : index
    %c0_4 = arith.constant 0 : index
    %1 = vector.load %arg2[%c0_2, %c0_3, %c0_4] : memref<9x8x4xf32, #tpu.memory_space<vmem>>, vector<9x8x4xf32>
    %c0_5 = arith.constant 0 : index
    %c0_6 = arith.constant 0 : index
    %2 = vector.load %arg3[%c0_5, %c0_6] : memref<8x1xf32, #tpu.memory_space<vmem>>, vector<8x1xf32>
    %cst = arith.constant 0.000000e+00 : f32
    %3 = vector.broadcast %cst : f32 to vector<8x256xf32>
    %c17_i32 = arith.constant 17 : i32
    %4 = tpu.dynamic_rotate %0 by %c17_i32 dim 2 : vector<1x4x256xf32>, i32 -> vector<1x4x256xf32>
    %c0_7 = arith.constant 0 : index
    %c0_8 = arith.constant 0 : index
    %c0_9 = arith.constant 0 : index
    %5 = vector.load %arg4[%c0_7, %c0_8, %c0_9] : memref<9x1x256xf32, #tpu.memory_space<vmem>>, vector<1x1x256xf32>
    %6 = vector.shape_cast %5 : vector<1x1x256xf32> to vector<1x256xf32>
    %7 = vector.shape_cast %6 : vector<1x256xf32> to vector<1x1x256xf32>
    %8 = vector.broadcast %7 : vector<1x1x256xf32> to vector<1x4x256xf32>
    %9 = arith.mulf %4, %8 : vector<1x4x256xf32>
    %10 = vector.extract_strided_slice %1 {offsets = [0, 0, 0], sizes = [1, 8, 4], strides = [1, 1, 1]} : vector<9x8x4xf32> to vector<1x8x4xf32>
    %11 = vector.shape_cast %10 : vector<1x8x4xf32> to vector<8x4xf32>
    %12 = vector.shape_cast %9 : vector<1x4x256xf32> to vector<4x256xf32>
    %cst_10 = arith.constant dense<0.000000e+00> : vector<8x256xf32>
    %13 = tpu.matmul %11, %12, %cst_10 {dimension_numbers = #tpu.dot_dimension_numbers<[1], [0], [0], [1], [0, 0, 1, 1], [], []>} : vector<8x4xf32>, vector<4x256xf32>, vector<8x256xf32> -> vector<8x256xf32>
    %14 = arith.addf %3, %13 : vector<8x256xf32>
    %c16_i32 = arith.constant 16 : i32
    %15 = tpu.dynamic_rotate %0 by %c16_i32 dim 2 : vector<1x4x256xf32>, i32 -> vector<1x4x256xf32>
    %c1 = arith.constant 1 : index
    %c0_11 = arith.constant 0 : index
    %c0_12 = arith.constant 0 : index
    %16 = vector.load %arg4[%c1, %c0_11, %c0_12] : memref<9x1x256xf32, #tpu.memory_space<vmem>>, vector<1x1x256xf32>
    %17 = vector.shape_cast %16 : vector<1x1x256xf32> to vector<1x256xf32>
    %18 = vector.shape_cast %17 : vector<1x256xf32> to vector<1x1x256xf32>
    %19 = vector.broadcast %18 : vector<1x1x256xf32> to vector<1x4x256xf32>
    %20 = arith.mulf %15, %19 : vector<1x4x256xf32>
    %21 = vector.extract_strided_slice %1 {offsets = [1, 0, 0], sizes = [1, 8, 4], strides = [1, 1, 1]} : vector<9x8x4xf32> to vector<1x8x4xf32>
    %22 = vector.shape_cast %21 : vector<1x8x4xf32> to vector<8x4xf32>
    %23 = vector.shape_cast %20 : vector<1x4x256xf32> to vector<4x256xf32>
    %cst_13 = arith.constant dense<0.000000e+00> : vector<8x256xf32>
    %24 = tpu.matmul %22, %23, %cst_13 {dimension_numbers = #tpu.dot_dimension_numbers<[1], [0], [0], [1], [0, 0, 1, 1], [], []>} : vector<8x4xf32>, vector<4x256xf32>, vector<8x256xf32> -> vector<8x256xf32>
    %25 = arith.addf %14, %24 : vector<8x256xf32>
    %c15_i32 = arith.constant 15 : i32
    %26 = tpu.dynamic_rotate %0 by %c15_i32 dim 2 : vector<1x4x256xf32>, i32 -> vector<1x4x256xf32>
    %c2 = arith.constant 2 : index
    %c0_14 = arith.constant 0 : index
    %c0_15 = arith.constant 0 : index
    %27 = vector.load %arg4[%c2, %c0_14, %c0_15] : memref<9x1x256xf32, #tpu.memory_space<vmem>>, vector<1x1x256xf32>
    %28 = vector.shape_cast %27 : vector<1x1x256xf32> to vector<1x256xf32>
    %29 = vector.shape_cast %28 : vector<1x256xf32> to vector<1x1x256xf32>
    %30 = vector.broadcast %29 : vector<1x1x256xf32> to vector<1x4x256xf32>
    %31 = arith.mulf %26, %30 : vector<1x4x256xf32>
    %32 = vector.extract_strided_slice %1 {offsets = [2, 0, 0], sizes = [1, 8, 4], strides = [1, 1, 1]} : vector<9x8x4xf32> to vector<1x8x4xf32>
    %33 = vector.shape_cast %32 : vector<1x8x4xf32> to vector<8x4xf32>
    %34 = vector.shape_cast %31 : vector<1x4x256xf32> to vector<4x256xf32>
    %cst_16 = arith.constant dense<0.000000e+00> : vector<8x256xf32>
    %35 = tpu.matmul %33, %34, %cst_16 {dimension_numbers = #tpu.dot_dimension_numbers<[1], [0], [0], [1], [0, 0, 1, 1], [], []>} : vector<8x4xf32>, vector<4x256xf32>, vector<8x256xf32> -> vector<8x256xf32>
    %36 = arith.addf %25, %35 : vector<8x256xf32>
    %c1_i32 = arith.constant 1 : i32
    %37 = tpu.dynamic_rotate %0 by %c1_i32 dim 2 : vector<1x4x256xf32>, i32 -> vector<1x4x256xf32>
    %c3 = arith.constant 3 : index
    %c0_17 = arith.constant 0 : index
    %c0_18 = arith.constant 0 : index
    %38 = vector.load %arg4[%c3, %c0_17, %c0_18] : memref<9x1x256xf32, #tpu.memory_space<vmem>>, vector<1x1x256xf32>
    %39 = vector.shape_cast %38 : vector<1x1x256xf32> to vector<1x256xf32>
    %40 = vector.shape_cast %39 : vector<1x256xf32> to vector<1x1x256xf32>
    %41 = vector.broadcast %40 : vector<1x1x256xf32> to vector<1x4x256xf32>
    %42 = arith.mulf %37, %41 : vector<1x4x256xf32>
    %43 = vector.extract_strided_slice %1 {offsets = [3, 0, 0], sizes = [1, 8, 4], strides = [1, 1, 1]} : vector<9x8x4xf32> to vector<1x8x4xf32>
    %44 = vector.shape_cast %43 : vector<1x8x4xf32> to vector<8x4xf32>
    %45 = vector.shape_cast %42 : vector<1x4x256xf32> to vector<4x256xf32>
    %cst_19 = arith.constant dense<0.000000e+00> : vector<8x256xf32>
    %46 = tpu.matmul %44, %45, %cst_19 {dimension_numbers = #tpu.dot_dimension_numbers<[1], [0], [0], [1], [0, 0, 1, 1], [], []>} : vector<8x4xf32>, vector<4x256xf32>, vector<8x256xf32> -> vector<8x256xf32>
    %47 = arith.addf %36, %46 : vector<8x256xf32>
    %48 = vector.extract_strided_slice %1 {offsets = [4, 0, 0], sizes = [1, 8, 4], strides = [1, 1, 1]} : vector<9x8x4xf32> to vector<1x8x4xf32>
    %49 = vector.shape_cast %48 : vector<1x8x4xf32> to vector<8x4xf32>
    %50 = vector.shape_cast %0 : vector<1x4x256xf32> to vector<4x256xf32>
    %cst_20 = arith.constant dense<0.000000e+00> : vector<8x256xf32>
    %51 = tpu.matmul %49, %50, %cst_20 {dimension_numbers = #tpu.dot_dimension_numbers<[1], [0], [0], [1], [0, 0, 1, 1], [], []>} : vector<8x4xf32>, vector<4x256xf32>, vector<8x256xf32> -> vector<8x256xf32>
    %52 = arith.addf %47, %51 : vector<8x256xf32>
    %c255_i32 = arith.constant 255 : i32
    %53 = tpu.dynamic_rotate %0 by %c255_i32 dim 2 : vector<1x4x256xf32>, i32 -> vector<1x4x256xf32>
    %c5 = arith.constant 5 : index
    %c0_21 = arith.constant 0 : index
    %c0_22 = arith.constant 0 : index
    %54 = vector.load %arg4[%c5, %c0_21, %c0_22] : memref<9x1x256xf32, #tpu.memory_space<vmem>>, vector<1x1x256xf32>
    %55 = vector.shape_cast %54 : vector<1x1x256xf32> to vector<1x256xf32>
    %56 = vector.shape_cast %55 : vector<1x256xf32> to vector<1x1x256xf32>
    %57 = vector.broadcast %56 : vector<1x1x256xf32> to vector<1x4x256xf32>
    %58 = arith.mulf %53, %57 : vector<1x4x256xf32>
    %59 = vector.extract_strided_slice %1 {offsets = [5, 0, 0], sizes = [1, 8, 4], strides = [1, 1, 1]} : vector<9x8x4xf32> to vector<1x8x4xf32>
    %60 = vector.shape_cast %59 : vector<1x8x4xf32> to vector<8x4xf32>
    %61 = vector.shape_cast %58 : vector<1x4x256xf32> to vector<4x256xf32>
    %cst_23 = arith.constant dense<0.000000e+00> : vector<8x256xf32>
    %62 = tpu.matmul %60, %61, %cst_23 {dimension_numbers = #tpu.dot_dimension_numbers<[1], [0], [0], [1], [0, 0, 1, 1], [], []>} : vector<8x4xf32>, vector<4x256xf32>, vector<8x256xf32> -> vector<8x256xf32>
    %63 = arith.addf %52, %62 : vector<8x256xf32>
    %c241_i32 = arith.constant 241 : i32
    %64 = tpu.dynamic_rotate %0 by %c241_i32 dim 2 : vector<1x4x256xf32>, i32 -> vector<1x4x256xf32>
    %c6 = arith.constant 6 : index
    %c0_24 = arith.constant 0 : index
    %c0_25 = arith.constant 0 : index
    %65 = vector.load %arg4[%c6, %c0_24, %c0_25] : memref<9x1x256xf32, #tpu.memory_space<vmem>>, vector<1x1x256xf32>
    %66 = vector.shape_cast %65 : vector<1x1x256xf32> to vector<1x256xf32>
    %67 = vector.shape_cast %66 : vector<1x256xf32> to vector<1x1x256xf32>
    %68 = vector.broadcast %67 : vector<1x1x256xf32> to vector<1x4x256xf32>
    %69 = arith.mulf %64, %68 : vector<1x4x256xf32>
    %70 = vector.extract_strided_slice %1 {offsets = [6, 0, 0], sizes = [1, 8, 4], strides = [1, 1, 1]} : vector<9x8x4xf32> to vector<1x8x4xf32>
    %71 = vector.shape_cast %70 : vector<1x8x4xf32> to vector<8x4xf32>
    %72 = vector.shape_cast %69 : vector<1x4x256xf32> to vector<4x256xf32>
    %cst_26 = arith.constant dense<0.000000e+00> : vector<8x256xf32>
    %73 = tpu.matmul %71, %72, %cst_26 {dimension_numbers = #tpu.dot_dimension_numbers<[1], [0], [0], [1], [0, 0, 1, 1], [], []>} : vector<8x4xf32>, vector<4x256xf32>, vector<8x256xf32> -> vector<8x256xf32>
    %74 = arith.addf %63, %73 : vector<8x256xf32>
    %c240_i32 = arith.constant 240 : i32
    %75 = tpu.dynamic_rotate %0 by %c240_i32 dim 2 : vector<1x4x256xf32>, i32 -> vector<1x4x256xf32>
    %c7 = arith.constant 7 : index
    %c0_27 = arith.constant 0 : index
    %c0_28 = arith.constant 0 : index
    %76 = vector.load %arg4[%c7, %c0_27, %c0_28] : memref<9x1x256xf32, #tpu.memory_space<vmem>>, vector<1x1x256xf32>
    %77 = vector.shape_cast %76 : vector<1x1x256xf32> to vector<1x256xf32>
    %78 = vector.shape_cast %77 : vector<1x256xf32> to vector<1x1x256xf32>
    %79 = vector.broadcast %78 : vector<1x1x256xf32> to vector<1x4x256xf32>
    %80 = arith.mulf %75, %79 : vector<1x4x256xf32>
    %81 = vector.extract_strided_slice %1 {offsets = [7, 0, 0], sizes = [1, 8, 4], strides = [1, 1, 1]} : vector<9x8x4xf32> to vector<1x8x4xf32>
    %82 = vector.shape_cast %81 : vector<1x8x4xf32> to vector<8x4xf32>
    %83 = vector.shape_cast %80 : vector<1x4x256xf32> to vector<4x256xf32>
    %cst_29 = arith.constant dense<0.000000e+00> : vector<8x256xf32>
    %84 = tpu.matmul %82, %83, %cst_29 {dimension_numbers = #tpu.dot_dimension_numbers<[1], [0], [0], [1], [0, 0, 1, 1], [], []>} : vector<8x4xf32>, vector<4x256xf32>, vector<8x256xf32> -> vector<8x256xf32>
    %85 = arith.addf %74, %84 : vector<8x256xf32>
    %c239_i32 = arith.constant 239 : i32
    %86 = tpu.dynamic_rotate %0 by %c239_i32 dim 2 : vector<1x4x256xf32>, i32 -> vector<1x4x256xf32>
    %c8 = arith.constant 8 : index
    %c0_30 = arith.constant 0 : index
    %c0_31 = arith.constant 0 : index
    %87 = vector.load %arg4[%c8, %c0_30, %c0_31] : memref<9x1x256xf32, #tpu.memory_space<vmem>>, vector<1x1x256xf32>
    %88 = vector.shape_cast %87 : vector<1x1x256xf32> to vector<1x256xf32>
    %89 = vector.shape_cast %88 : vector<1x256xf32> to vector<1x1x256xf32>
    %90 = vector.broadcast %89 : vector<1x1x256xf32> to vector<1x4x256xf32>
    %91 = arith.mulf %86, %90 : vector<1x4x256xf32>
    %92 = vector.extract_strided_slice %1 {offsets = [8, 0, 0], sizes = [1, 8, 4], strides = [1, 1, 1]} : vector<9x8x4xf32> to vector<1x8x4xf32>
    %93 = vector.shape_cast %92 : vector<1x8x4xf32> to vector<8x4xf32>
    %94 = vector.shape_cast %91 : vector<1x4x256xf32> to vector<4x256xf32>
    %cst_32 = arith.constant dense<0.000000e+00> : vector<8x256xf32>
    %95 = tpu.matmul %93, %94, %cst_32 {dimension_numbers = #tpu.dot_dimension_numbers<[1], [0], [0], [1], [0, 0, 1, 1], [], []>} : vector<8x4xf32>, vector<4x256xf32>, vector<8x256xf32> -> vector<8x256xf32>
    %96 = arith.addf %85, %95 : vector<8x256xf32>
    %97 = vector.broadcast %2 : vector<8x1xf32> to vector<8x256xf32>
    %98 = arith.addf %96, %97 : vector<8x256xf32>
    %cst_33 = arith.constant 0.000000e+00 : f32
    %99 = vector.broadcast %cst_33 : f32 to vector<8x256xf32>
    %100 = arith.maximumf %98, %99 : vector<8x256xf32>
    %c0_34 = arith.constant 0 : index
    %c0_35 = arith.constant 0 : index
    %c0_36 = arith.constant 0 : index
    %101 = vector.load %arg5[%c0_34, %c0_35, %c0_36] : memref<1x8x256xf32, #tpu.memory_space<vmem>>, vector<1x8x256xf32>
    %102 = vector.shape_cast %101 : vector<1x8x256xf32> to vector<8x256xf32>
    %103 = vector.shape_cast %100 : vector<8x256xf32> to vector<1x8x256xf32>
    tpu.vector_store %arg5[%c0_34, %c0_35, %c0_36], %103 {strides = array<i32>} : memref<1x8x256xf32, #tpu.memory_space<vmem>>, vector<1x8x256xf32>,
    return
  }
  func.func @transform_0(%arg0: i32) -> (i32, i32, i32) {
    %c0_i32 = arith.constant 0 : i32
    %c0_i32_0 = arith.constant 0 : i32
    %c0_i32_1 = arith.constant 0 : i32
    return %arg0, %c0_i32, %c0_i32_0 : i32, i32, i32
  }
  func.func @transform_1(%arg0: i32) -> (i32, i32, i32) {
    %c0_i32 = arith.constant 0 : i32
    %c0_i32_0 = arith.constant 0 : i32
    %c0_i32_1 = arith.constant 0 : i32
    %c0_i32_2 = arith.constant 0 : i32
    return %c0_i32, %c0_i32_0, %c0_i32_1 : i32, i32, i32
  }
  func.func @transform_2(%arg0: i32) -> (i32, i32) {
    %c0_i32 = arith.constant 0 : i32
    %c0_i32_0 = arith.constant 0 : i32
    %c0_i32_1 = arith.constant 0 : i32
    return %c0_i32, %c0_i32_0 : i32, i32
  }
  func.func @transform_3(%arg0: i32) -> (i32, i32, i32) {
    %c0_i32 = arith.constant 0 : i32
    %c0_i32_0 = arith.constant 0 : i32
    %c0_i32_1 = arith.constant 0 : i32
    %c0_i32_2 = arith.constant 0 : i32
    return %c0_i32, %c0_i32_0, %c0_i32_1 : i32, i32, i32
  }
  func.func @transform_4(%arg0: i32) -> (i32, i32, i32) {
    %c0_i32 = arith.constant 0 : i32
    %c0_i32_0 = arith.constant 0 : i32
    %c0_i32_1 = arith.constant 0 : i32
    return %arg0, %c0_i32, %c0_i32_0 : i32, i32, i32
  }
}

</mosaic_0001>

<bundles_post_ra>
// kernel: tpu_custom_call.1
= control target key start
LH: loop header
LB: loop body
LE: loop exit
PB: predicated region body
PF: predicated region fallthrough
CT: control target
= control target key end

     0   :  { %9 = vsyncpa [#allocation3], 0  ;;  %s1318_s0 = inlined_call_operand.vmem [shape: f32[2,4,256], index: 0, kind: input, shape index: {}]   ;;  %s1319_s1 = inlined_call_operand.vmem [shape: f32[9,8,4], index: 1, kind: input, shape index: {}]   ;;  %s1320_s2 = inlined_call_operand.vmem [shape: f32[8,1], index: 2, kind: input, shape index: {}]   ;;  %s1321_s3 = inlined_call_operand.vmem [shape: f32[9,1,256], index: 3, kind: input, shape index: {}]   ;;  %s1322_s4 = inlined_call_operand.hbm [shape: f32[2,8,256], index: 4, kind: output, shape index: {}]  }
   0x1   :  { %11 = vsyncpa [#allocation3 + $0x1], 0  ;;  %s1127_s15 = smov 0   ;;  %s1129_s16 = smov 0  }
   0x2   :  { %s1131_s17 = smov 0   ;;  %s1133_s18 = smov 0  }
   0x3 LB: > { %s1148_s19 = sadd.s32 4294967295, %s1091_s18   ;;  %s922_s20 = sadd.s32 4294967294, %s1091_s18   ;;  %s1091_s18 = sphi %s1133_s18, %s1328_s18   ;;  %s1087_s17 = sphi %s1131_s17, %s1327_s17   ;;  %s1083_s16 = sphi %s1129_s16, %s1326_s16   ;;  %s1079_s15 = sphi %s1127_s15, %s1325_s15  }
   0x4   : > { %s1152_s21 = sadd.s32 1, %s1091_s18   ;;  %s113_s22 = sadd.s32 1, %s1087_s17 }
   0x5   : > { %s110_s23 = ssub.s32 %s1091_s18, %s1152_s21  ;;  %p123_p0 = scmp.ne.s32.totalorder %s1087_s17, %s1083_s16 }
   0x6   : > { %p111_p1 = scmp.eq.s32.totalorder %s110_s23, 0  ;;  %p124_p2 = scmp.eq.s32.totalorder %s1148_s19, 1 }
   0x7   : > { %p129_p3 = scmp.ne.s32.totalorder %s1083_s16, %s1079_s15  ;;  %p130_p4 = scmp.eq.s32.totalorder %s922_s20, 1 }
   0x8   : > { %s1163_s24 = scalar_select %p111_p1, %s1087_s17, %s113_s22  }
   0x9   : > { %p1165_p5 = por %p124_p2, %p123_p0  ;;  %p1169_p6 = por %p130_p4, %p129_p3 }
   0xa   : > { %p925_p7 = scmp.ge.s32.totalorder %s1091_s18, 1  ;;  %p165_p8 = scmp.lt.s32.totalorder %s1091_s18, 3 }
   0xc   : > { %p166_p9 = pnand %p925_p7, %p165_p8 }
   0xd   : > { %p191_p10 = scmp.lt.s32.totalorder (!%p166_p9), %s1148_s19, 1  ;;  %s1093_s6 = smov (!%p166_p9), 17  }
   0xe   : > { %169 = sbr.rel (%p166_p9) target bundleno = 351 (0x15f), region = 36  ;;  %s1094_s7 = smov (!%p166_p9), 16  }
   0xf   : > { %s1095_s8 = smov (!%p166_p9), 15   ;;  %s1096_s9 = smov (!%p166_p9), 1  }
  0x10   : > { %s1097_s10 = smov (!%p166_p9), 127   ;;  %s1098_s11 = smov (!%p166_p9), 113  }
  0x11   : > { %s1099_s12 = smov (!%p166_p9), 112   ;;  %s1100_s13 = smov (!%p166_p9), 111  }
  0x12   : > { %s188_s22 = sand.u32 (!%p166_p9), 1, %s1083_s16  }
  0x13   : > { %s192_s27 = scalar_select %p191_p10, %s1148_s19, 1  ;;  %v217_v19 = vlaneseq  ;;  %v222_v23 = vld [vmem:[%s1321_s3] sm:$0x3]  ;;  %vm255_vm1 = vcmask 1043456   ;;  %vm251_vm2 = vcmask 31744   ;;  %v198_v47 = vld [vmem:[%s1319_s1 + $0x8] sm:$0xff] }
  0x14   : > { %v224_v24 = vperm.slane %v222_v23, 0  ;;  %v225_v25 = vperm.slane %v222_v23, 1  ;;  %v197_v32 = vld [vmem:[%s1319_s1] sm:$0xff]  ;;  %v199_v59 = vld [vmem:[%s1319_s1 + $0x10] sm:$0xff]  ;;  %v200_v60 = vld [vmem:[%s1319_s1 + $0x18] sm:$0xff]  ;;  %s926_s23 = sshll.u32 %s188_s22, 4 }
  0x15   : > { %s977_s28 = sshll.u32 %s192_s27, 3  ;;  %v1184_v21 = vand.u32 127, %v217_v19  ;;  %v929_v33 = vld [vmem:[%s1321_s3 + $0x2] sm:$0x3]  ;;  %v938_v34 = vld [vmem:[%s1321_s3 + $0x4] sm:$0x3] }
  0x16   : > { %s195_s5 = scalar_lea.vmem %s1318_s0, %s977_s28  ;;  %v245_v36 = vperm.slane %v929_v33, 0  ;;  %v246_v37 = vperm.slane %v929_v33, 1  ;;  %v366_v38 = vperm.slane %v938_v34, 0  ;;  %v367_v39 = vperm.slane %v938_v34, 1  ;;  %v943_v50 = vld [vmem:[%s1321_s3 + $0x6] sm:$0x3] }
  0x17   : > { %v196_v0 = vld [vmem:[%s195_s5] sm:$0xff]  ;;  %vm219_vm0 = vcmp.lt.s32.totalorder %v1184_v21, 17  ;;  %vm360_vm3 = vcmp.lt.s32.totalorder %v1184_v21, 15  ;;  %vm239_vm4 = vcmp.lt.s32.totalorder %v1184_v21, 16  ;;  %vm432_vm5 = vcmp.lt.s32.totalorder %v1184_v21, 1  ;;  %v203_v19 = vld [vmem:[%s1319_s1 + $0x30] sm:$0xff] }
  0x18   : > { %208 = vst [vmem:[#allocation1] ss:$2 sm:$0xff] %v196_v0  ;;  %v438_v51 = vperm.slane %v943_v50, 0  ;;  %v439_v52 = vperm.slane %v943_v50, 1  ;;  %v201_v61 = vld [vmem:[%s1319_s1 + $0x20] sm:$0xff]  ;;  %vm556_vm6 = vcmp.lt.s32.totalorder %v1184_v21, 127 }
  0x19   : > { %v952_v62 = vld [vmem:[%s1321_s3 + $0xa] sm:$0x3]  ;;  %vm628_vm7 = vcmp.lt.s32.totalorder %v1184_v21, 113  ;;  %vm700_vm8 = vcmp.lt.s32.totalorder %v1184_v21, 112  ;;  %vm772_vm9 = vcmp.lt.s32.totalorder %v1184_v21, 111  ;;  %s978_s27 = sshll.u32 %s1148_s19, 4 }
  0x1a   : > { %s858_s30 = scalar_lea.hbm %s1322_s4, %s978_s27  ;;  %s190_s5 = scalar_lea.vmem [#allocation2], %s926_s23 }
  0x1b   : > { %s847_s19 = scalar_lea.sflag [#allocation3], %s188_s22 }
  0x1f   : > { %v209_v1 = vld.sshfl [vmem:[#allocation1] sm:$0xff pattern:$0x75316420]  ;;  %v210_v2 = vld.sshfl [vmem:[#allocation1 + $0x8] sm:$0xff pattern:$0x75316420] }
  0x20   : > { %213 = vrot.lane.b32.xlu0 %v209_v1, %s1093_s6  ;;  %230 = vst [vmem:[#allocation1] ss:$2 sm:$0xff] %v196_v0  ;;  %v562_v1 = vperm.slane %v952_v62, 0 }
  0x27   : > { %v231_v3 = vld.sshfl [vmem:[#allocation1] sm:$0xff pattern:$0x75316420]  ;;  %v232_v4 = vld.sshfl [vmem:[#allocation1 + $0x8] sm:$0xff pattern:$0x75316420] }
  0x28   : > { %235 = vrot.lane.b32.xlu1 %v231_v3, %s1094_s7  ;;  %215 = vrot.lane.b32.xlu0 %v210_v2, %s1093_s6  ;;  %351 = vst [vmem:[#allocation1] ss:$2 sm:$0xff] %v196_v0  ;;  %v563_v2 = vperm.slane %v952_v62, 1  ;;  %v1101_v3 = vmov 0   ;;  %s860_s6 = sshll.u32 %s190_s5, 4  ;;  %s861_s6 = int_to_ptr.vmem [resolvable:$true] %s860_s6 }
  0x29   : > { %1027 = vset.pattern.permute.xlu1 %v1101_v3  ;;  %1028 = vset.pattern.permute.xlu0 %v1101_v3 }
  0x2f   : > { %v352_v5 = vld.sshfl [vmem:[#allocation1] sm:$0xff pattern:$0x75316420]  ;;  %v353_v6 = vld.sshfl [vmem:[#allocation1 + $0x8] sm:$0xff pattern:$0x75316420] }
  0x30   : > { %237 = vrot.lane.b32.xlu1 %v232_v4, %s1094_s7  ;;  %423 = vst [vmem:[#allocation1] ss:$2 sm:$0xff] %v196_v0  ;;  %356 = vrot.lane.b32.xlu2 %v352_v5, %s1095_s8  ;;  %s862_s7 = sshll.u32 %s858_s30, 4  ;;  %s863_s7 = int_to_ptr.hbm [resolvable:$true] %s862_s7 }
  0x37   : > { %v425_v7 = vld.sshfl [vmem:[#allocation1 + $0x8] sm:$0xff pattern:$0x75316420]  ;;  %v424_v8 = vld.sshfl [vmem:[#allocation1] sm:$0xff pattern:$0x75316420] }
  0x38   : > { %430 = vrot.lane.b32.xlu1 %v425_v7, %s1096_s9  ;;  %428 = vrot.lane.b32.xlu0 %v424_v8, %s1096_s9  ;;  %495 = vst [vmem:[#allocation1] ss:$2 sm:$0xff] %v196_v0 }
  0x39   : > { %358 = vrot.lane.b32.xlu2 %v353_v6, %s1095_s8  ;;  %s1043_s8 = sshra.s32 %s863_s7, 4  ;;  %s1044_s8 = int_to_ptr.hbm [resolvable:$true] %s1043_s8 }
  0x3a   : > { %s1045_s9 = scalar_lea.hbm %s1044_s8, 16  ;;  %p1050_p0 = scmp.lt.s32.totalorder %s1044_s8, %s1322_s4 }
  0x3b   : > { %p1046_p11 = scmp.ne.s32.totalorder %s1044_s8, %s1045_s9 }
  0x3d   : > { %p1047_p12 = pnand %p1046_p11, %p1165_p5 }
  0x3f   : > { %v1180_v9 = vld.sshfl [vmem:[#allocation1] sm:$0xff pattern:$0x75316420]  ;;  %v1182_v10 = vld.sshfl [vmem:[#allocation1 + $0x8] sm:$0xff pattern:$0x75316420]  ;;  %p1048_p13 = pneg %p1047_p12 }
  0x40   : > { %547 = vst [vmem:[#allocation1] ss:$2 sm:$0xff] %v196_v0 }
  0x47   : > { %v549_v11 = vld.sshfl [vmem:[#allocation1 + $0x8] sm:$0xff pattern:$0x75316420]  ;;  %v548_v12 = vld.sshfl [vmem:[#allocation1] sm:$0xff pattern:$0x75316420] }
  0x48   : > { %554 = vrot.lane.b32.xlu0 %v549_v11, %s1097_s10  ;;  %619 = vst [vmem:[#allocation1] ss:$2 sm:$0xff] %v196_v0  ;;  %552 = vrot.lane.b32.xlu2 %v548_v12, %s1097_s10 }
  0x4f   : > { %v620_v13 = vld.sshfl [vmem:[#allocation1] sm:$0xff pattern:$0x75316420]  ;;  %v621_v14 = vld.sshfl [vmem:[#allocation1 + $0x8] sm:$0xff pattern:$0x75316420] }
  0x50   : > { %624 = vrot.lane.b32.xlu1 %v620_v13, %s1098_s11  ;;  %691 = vst [vmem:[#allocation1] ss:$2 sm:$0xff] %v196_v0  ;;  %626 = vrot.lane.b32.xlu2 %v621_v14, %s1098_s11 }
  0x57   : > { %v693_v15 = vld.sshfl [vmem:[#allocation1 + $0x8] sm:$0xff pattern:$0x75316420]  ;;  %v692_v16 = vld.sshfl [vmem:[#allocation1] sm:$0xff pattern:$0x75316420] }
  0x58   : > { %698 = vrot.lane.b32.xlu1 %v693_v15, %s1099_s12  ;;  %696 = vrot.lane.b32.xlu0 %v692_v16, %s1099_s12  ;;  %763 = vst [vmem:[#allocation1] ss:$2 sm:$0xff] %v196_v0  ;;  %v206_v0 = vld [vmem:[%s1320_s2] sm:$0xff]  ;;  %s1049_s12 = scalar_lea.hbm %s1322_s4, 32 }
  0x59   : > { %p1051_p1 = scmp.lt.s32.totalorder %s1049_s12, %s1045_s9 }
  0x5b   : > { %p1052_p2 = por %p1051_p1, %p1050_p0 }
  0x5d   : > { %p1053_p3 = pnand %p1052_p2, %p1048_p13 }
  0x5f   : > { %v765_v17 = vld.sshfl [vmem:[#allocation1 + $0x8] sm:$0xff pattern:$0x75316420]  ;;  %v764_v18 = vld.sshfl [vmem:[#allocation1] sm:$0xff pattern:$0x75316420] }
  0x60   : > { %770 = vrot.lane.b32.xlu0 %v765_v17, %s1100_s13  ;;  %768 = vrot.lane.b32.xlu2 %v764_v18, %s1100_s13 }
  0x61   : > { %837 = vperm.xlu1 %1027, %v206_v0  }
  0x8a   : > { %v357_v22 = vpop.permute.xlu2 %356 }
  0x92   : > { %v214_v20 = vpop.permute.xlu0 %213 }
  0x93   : > { %v359_v35 = vpop.permute.xlu2 %358 }
  0x94   : > { %v361_v40 = vsel %vm360_vm3, %v357_v22, %v359_v35  ;;  %v362_v41 = vsel %vm360_vm3, %v359_v35, %v357_v22 }
  0x95   : > { %v370_v48 = vmul.f32 %v366_v38, %v362_v41  ;;  %v371_v49 = vmul.f32 %v367_v39, %v361_v40  ;;  %v205_v40 = vld [vmem:[%s1319_s1 + $0x40] sm:$0xff] }
  0x9a   : > { %v236_v26 = vpop.permute.xlu1 %235  ;;  %v216_v27 = vpop.permute.xlu0 %215 }
  0x9b   : > { %v220_v28 = vsel %vm219_vm0, %v214_v20, %v216_v27  ;;  %v221_v29 = vsel %vm219_vm0, %v216_v27, %v214_v20  ;;  %v962_v20 = vld [vmem:[%s1321_s3 + $0xe] sm:$0x3] }
  0x9c   : > { %v228_v30 = vmul.f32 %v224_v24, %v221_v29  ;;  %v229_v31 = vmul.f32 %v225_v25, %v220_v28  ;;  %v706_v22 = vperm.slane %v962_v20, 0  ;;  %v707_v23 = vperm.slane %v962_v20, 1 }
  0x9e   : > { %934 = vmatpush.msk.msra.mxu2 %vm255_vm1, %v228_v30  ;;  %936 = vmatpush.msk.msra.mxu3 %vm255_vm1, %v229_v31  ;;  %v204_v30 = vld [vmem:[%s1319_s1 + $0x38] sm:$0xff]  ;;  %v967_v31 = vld [vmem:[%s1321_s3 + $0x10] sm:$0x3] }
  0x9f   : > { %935 = vmatmul.msk.f32.vlgmr.msra.gmra.mxu2 %vm251_vm2, %v197_v32  ;;  %937 = vmatmul.msk.f32.vlgmr.msra.gmra.mxu3 %vm251_vm2, %v197_v32  ;;  %v778_v32 = vperm.slane %v967_v31, 0  ;;  %v779_v33 = vperm.slane %v967_v31, 1 }
  0xa2   : > { %v238_v42 = vpop.permute.xlu1 %237  ;;  %v553_v63 = vpop.permute.xlu2 %552 }
  0xa3   : > { %v240_v43 = vsel %vm239_vm4, %v236_v26, %v238_v42  ;;  %v241_v44 = vsel %vm239_vm4, %v238_v42, %v236_v26 }
  0xa4   : > { %v249_v45 = vmul.f32 %v245_v36, %v241_v44  ;;  %v250_v46 = vmul.f32 %v246_v37, %v240_v43 }
  0xa6   : > { %930 = vmatpush.msk.msra.mxu0 %vm255_vm1, %v249_v45  ;;  %932 = vmatpush.msk.msra.mxu1 %vm255_vm1, %v250_v46 }
  0xa7   : > { %931 = vmatmul.msk.f32.vlgmr.msra.gmra.mxu0 %vm251_vm2, %v198_v47  ;;  %933 = vmatmul.msk.f32.vlgmr.msra.gmra.mxu1 %vm251_vm2, %v198_v47 }
  0xa8   : > { %939 = vmatpush.msk.msrb.mxu0 %vm255_vm1, %v370_v48  ;;  %941 = vmatpush.msk.msrb.mxu1 %vm255_vm1, %v371_v49 }
  0xaa   : > { %948 = vmatpush.msk.msra.mxu0 %vm255_vm1, %v1180_v9  ;;  %950 = vmatpush.msk.msra.mxu1 %vm255_vm1, %v1182_v10  ;;  %v431_v53 = vpop.permute.xlu1 %430  ;;  %v429_v54 = vpop.permute.xlu0 %428  ;;  %v202_v9 = vld [vmem:[%s1319_s1 + $0x28] sm:$0xff] }
  0xab   : > { %v433_v55 = vsel %vm432_vm5, %v429_v54, %v431_v53  ;;  %v434_v56 = vsel %vm432_vm5, %v431_v53, %v429_v54  ;;  %v957_v10 = vld [vmem:[%s1321_s3 + $0xc] sm:$0x3]  ;;  %v627_v11 = vpop.permute.xlu2 %626 }
  0xac   : > { %v442_v57 = vmul.f32 %v438_v51, %v434_v56  ;;  %v443_v58 = vmul.f32 %v439_v52, %v433_v55  ;;  %v634_v12 = vperm.slane %v957_v10, 0  ;;  %v635_v13 = vperm.slane %v957_v10, 1 }
  0xae   : > { %944 = vmatpush.msk.msrb.mxu2 %vm255_vm1, %v442_v57  ;;  %946 = vmatpush.msk.msrb.mxu3 %vm255_vm1, %v443_v58 }
  0xaf   : > { %940 = vmatmul.msk.f32.vlgmr.msrb.gmra.mxu0 %vm251_vm2, %v199_v59  ;;  %942 = vmatmul.msk.f32.vlgmr.msrb.gmra.mxu1 %vm251_vm2, %v199_v59 }
  0xb0   : > { %945 = vmatmul.msk.f32.vlgmr.msrb.gmra.mxu2 %vm251_vm2, %v200_v60  ;;  %947 = vmatmul.msk.f32.vlgmr.msrb.gmra.mxu3 %vm251_vm2, %v200_v60 }
  0xb7   : > { %949 = vmatmul.msk.f32.vlgmr.msra.gmra.mxu0 %vm251_vm2, %v201_v61  ;;  %951 = vmatmul.msk.f32.vlgmr.msra.gmra.mxu1 %vm251_vm2, %v201_v61 }
  0xba   : > { %v555_v4 = vpop.permute.xlu0 %554  ;;  %v769_v34 = vpop.permute.xlu2 %768 }
  0xbb   : > { %v557_v5 = vsel %vm556_vm6, %v553_v63, %v555_v4  ;;  %v558_v6 = vsel %vm556_vm6, %v555_v4, %v553_v63 }
  0xbc   : > { %v566_v7 = vmul.f32 %v562_v1, %v557_v5  ;;  %v567_v8 = vmul.f32 %v563_v2, %v558_v6 }
  0xbe   : > { %953 = vmatpush.msk.msra.mxu2 %vm255_vm1, %v566_v7  ;;  %955 = vmatpush.msk.msra.mxu3 %vm255_vm1, %v567_v8 }
  0xbf   : > { %954 = vmatmul.msk.f32.vlgmr.msra.gmra.mxu2 %vm251_vm2, %v202_v9  ;;  %956 = vmatmul.msk.f32.vlgmr.msra.gmra.mxu3 %vm251_vm2, %v202_v9 }
  0xc2   : > { %v625_v14 = vpop.permute.xlu1 %624 }
  0xc3   : > { %v629_v15 = vsel %vm628_vm7, %v625_v14, %v627_v11  ;;  %v630_v16 = vsel %vm628_vm7, %v627_v11, %v625_v14 }
  0xc4   : > { %v638_v17 = vmul.f32 %v634_v12, %v629_v15  ;;  %v639_v18 = vmul.f32 %v635_v13, %v630_v16 }
  0xc6   : > { %958 = vmatpush.msk.msrb.mxu0 %vm255_vm1, %v638_v17  ;;  %960 = vmatpush.msk.msrb.mxu1 %vm255_vm1, %v639_v18 }
  0xc7   : > { %959 = vmatmul.msk.f32.vlgmr.msrb.gmra.mxu0 %vm251_vm2, %v203_v19  ;;  %961 = vmatmul.msk.f32.vlgmr.msrb.gmra.mxu1 %vm251_vm2, %v203_v19 }
  0xca   : > { %v699_v24 = vpop.permute.xlu1 %698  ;;  %v697_v25 = vpop.permute.xlu0 %696 }
  0xcb   : > { %v701_v26 = vsel %vm700_vm8, %v697_v25, %v699_v24  ;;  %v702_v27 = vsel %vm700_vm8, %v699_v24, %v697_v25 }
  0xcc   : > { %v710_v28 = vmul.f32 %v706_v22, %v701_v26  ;;  %v711_v29 = vmul.f32 %v707_v23, %v702_v27 }
  0xce   : > { %963 = vmatpush.msk.msrb.mxu2 %vm255_vm1, %v710_v28  ;;  %965 = vmatpush.msk.msrb.mxu3 %vm255_vm1, %v711_v29 }
  0xcf   : > { %964 = vmatmul.msk.f32.vlgmr.msrb.gmra.mxu2 %vm251_vm2, %v204_v30  ;;  %966 = vmatmul.msk.f32.vlgmr.msrb.gmra.mxu3 %vm251_vm2, %v204_v30 }
  0xd2   : > { %v771_v35 = vpop.permute.xlu0 %770 }
  0xd3   : > { %v773_v36 = vsel %vm772_vm9, %v769_v34, %v771_v35  ;;  %v774_v37 = vsel %vm772_vm9, %v771_v35, %v769_v34  ;;  %v838_v6 = vpop.permute.xlu1 %837 }
  0xd4   : > { %v782_v38 = vmul.f32 %v778_v32, %v773_v36  ;;  %v783_v39 = vmul.f32 %v779_v33, %v774_v37 }
  0xd6   : > { %968 = vmatpush.msk.msra.mxu0 %vm255_vm1, %v782_v38  ;;  %970 = vmatpush.msk.msra.mxu1 %vm255_vm1, %v783_v39 }
  0xd7   : > { %969 = vmatmul.msk.f32.vlgmr.msra.gmra.mxu0 %vm251_vm2, %v205_v40  ;;  %971 = vmatmul.msk.f32.vlgmr.msra.gmra.mxu1 %vm251_vm2, %v205_v40 }
 0x122   : > { %v328_v42 = vpop.f32.mrf.mxu2  ;;  %v348_v43 = vpop.f32.mrf.mxu3 }
 0x124   : > { %v279_v21 = vpop.f32.mrf.mxu0  ;;  %v299_v41 = vpop.f32.mrf.mxu1 }
 0x125   : > { %v329_v46 = vadd.f32 %v328_v42, %v279_v21  ;;  %v349_v47 = vadd.f32 %v348_v43, %v299_v41 }
 0x12c   : > { %v398_v44 = vpop.f32.mrf.mxu0  ;;  %v418_v45 = vpop.f32.mrf.mxu1 }
 0x12d   : > { %v421_v50 = vadd.f32 %v398_v44, %v329_v46  ;;  %v422_v51 = vadd.f32 %v418_v45, %v349_v47 }
 0x133   : > { %v470_v48 = vpop.f32.mrf.mxu2  ;;  %v490_v49 = vpop.f32.mrf.mxu3 }
 0x134   : > { %v522_v52 = vpop.f32.mrf.mxu0  ;;  %v542_v53 = vpop.f32.mrf.mxu1  ;;  %v493_v54 = vadd.f32 %v470_v48, %v421_v50  ;;  %v494_v55 = vadd.f32 %v490_v49, %v422_v51 }
 0x136   : > { %v545_v58 = vadd.f32 %v522_v52, %v493_v54  ;;  %v546_v59 = vadd.f32 %v542_v53, %v494_v55 }
 0x142   : > { %v594_v56 = vpop.f32.mrf.mxu2  ;;  %v614_v57 = vpop.f32.mrf.mxu3 }
 0x143   : > { %v617_v62 = vadd.f32 %v594_v56, %v545_v58  ;;  %v618_v63 = vadd.f32 %v614_v57, %v546_v59 }
 0x144   : > { %v666_v60 = vpop.f32.mrf.mxu0  ;;  %v686_v61 = vpop.f32.mrf.mxu1 }
 0x145   : > { %v689_v0 = vadd.f32 %v666_v60, %v617_v62  ;;  %v690_v1 = vadd.f32 %v686_v61, %v618_v63 }
 0x152   : > { %v738_v2 = vpop.f32.mrf.mxu2  ;;  %v758_v3 = vpop.f32.mrf.mxu3 }
 0x153   : > { %v761_v4 = vadd.f32 %v738_v2, %v689_v0  ;;  %v762_v5 = vadd.f32 %v758_v3, %v690_v1 }
 0x154   : > { %v810_v7 = vpop.f32.mrf.mxu0  ;;  %v830_v8 = vpop.f32.mrf.mxu1 }
 0x155   : > { %v833_v9 = vadd.f32 %v810_v7, %v761_v4  ;;  %v834_v10 = vadd.f32 %v830_v8, %v762_v5 }
 0x157   : > { %v840_v11 = vadd.f32 %v838_v6, %v833_v9  ;;  %v841_v12 = vadd.f32 %v838_v6, %v834_v10 }
 0x159   : > { %v842_v13 = vmax.f32 %v840_v11, 0.0  ;;  %v843_v14 = vmax.f32 %v841_v12, 0.0 }
 0x15b   : > { %844 = vst [vmem:[%s190_s5] sm:$0xff] %v842_v13 }
 0x15c   : > { %845 = vst [vmem:[%s190_s5 + $0x8] sm:$0xff] %v843_v14 }
 0x15d   : > { %1056 = shalt.err (!%p1053_p3)
}
 0x15e   : > { %979 = dma.vmem_to_hbm [thread:$0]  (%p1165_p5), %s861_s6, 256, %s863_s7, %s847_s19  }
 0x15f PF: > { %p985_p4 = scmp.ge.s32.totalorder %s1091_s18, 2  ;;  %s874_s20 = sand.u32 1, %s1079_s15  }
 0x160   : > { %s875_s22 = scalar_lea.sflag [#allocation3], %s874_s20 }
 0x161   : > { %p982_p7 = pnand %p985_p4, %p1169_p6 }
 0x163   : > { %p983_p8 = pneg %p982_p7 }
 0x165   : > { %1074 = dma.done.wait (%p983_p8), %s875_s22, 256  }
 0x166   : > { %1076 = vsyncadd (%p983_p8), %s875_s22, 4294967040  ;;  %p14_p9 = scmp.ge.s32.totalorder %s1152_s21, 4   ;;  %s1325_s15 = smov %s1083_s16 }
 0x167   : > { %s1326_s16 = smov %s1087_s17  ;;  %s1327_s17 = smov %s1163_s24 }
 0x168   : > { %s1328_s18 = smov %s1152_s21  ;;  %16 = sbr.rel (!%p14_p9) target bundleno = 3 (0x3), region = 78 }
 0x16d   :  { %881 = vsyncpa [#allocation3], 1 }
 0x16e   :  { %883 = vsyncpa [#allocation3 + $0x1], 1 }

</bundles_post_ra>
